<compile_context>
chip_gen: v6e
topology: v6e:2x2x1
jax: 0.10.0
libtpu: 0.0.40
codegen_flags: <defaults>
</compile_context>

<pallas_src>
import jax
import jax.numpy as jnp
import numpy as np
from jax.experimental import pallas as pl
from jax.experimental.pallas import tpu as pltpu


def _round_up(x, m):
    return ((x + m - 1) // m) * m


# Packed per-frame parameter column layout (lane-padded to 128 -> one unmasked
# load / one DMA descriptor per grid step instead of four partial blocks).
_ROT0, _TR0, _EXT0, _MASK, _FX, _FY, _CX, _CY = 0, 9, 12, 24, 25, 26, 27, 28
_PCOLS = 128


# ---------------------------------------------------------------------------
# Pallas kernel: per (frame tile, lane tile) step — bf16 shape-blend matmul on
# the MXU, rigid transform + camera projection as VPU broadcast FMAs, NaN mask
# injected via the translation columns, dense lane-aligned stores.
# ---------------------------------------------------------------------------
def _smplx_kernel(betas_ref,   # (TF, B)      bf16  per-frame shape coeffs
                  sd_ref,      # (3, B, LT)   bf16  blend dirs (verts|joints slab)
                  templ_ref,   # (3, 1, LT)   f32   template   (verts|joints slab)
                  w_ref,       # (1, LT)      f32   translation weight (1 | rowsum)
                  prm_ref,     # (TF, 128)    f32   packed per-frame params
                  p3d_ref,     # (3, TF, LT)  f32   out: world-space coordinates
                  p2d_ref):    # (2, TF, LT)  f32   out: pixel-space coordinates
    betas = betas_ref[...]                                     # (TF, B)
    prm = prm_ref[...]                                         # (TF, 128)
    w = w_ref[...]                                             # (1, LT)

    r = [prm[:, _ROT0 + c:_ROT0 + c + 1] for c in range(9)]    # (TF, 1) each
    t = [prm[:, _TR0 + c:_TR0 + c + 1] for c in range(3)]
    e = [prm[:, _EXT0 + c:_EXT0 + c + 1] for c in range(12)]
    valid = prm[:, _MASK:_MASK + 1] > jnp.float32(0.5)
    fx = prm[:, _FX:_FX + 1]
    fy = prm[:, _FY:_FY + 1]
    cx = prm[:, _CX:_CX + 1]
    cy = prm[:, _CY:_CY + 1]

    # NaN injection on three narrow (TF,1) columns; propagates through the adds
    # to every 3D/2D output lane (replaces ten full-width selects).
    nan = jnp.float32(jnp.nan)
    tm = [jnp.where(valid, t[c], nan) for c in range(3)]

    # Shape blend: three (TF,B)@(B,LT) MXU matmuls, bf16 in / f32 accumulate,
    # over the unified vertex+joint lane chunk; f32 template added after.
    shaped = [jnp.dot(betas, sd_ref[c], preferred_element_type=jnp.float32)
              + templ_ref[c] for c in range(3)]                # (TF, LT)

    # Global rigid transform: pure VPU broadcast FMAs (no 3x3 matmul).
    # Joint lanes get t * rowsum (folded regressor), vertex lanes t * 1.
    p3 = [r[3 * c] * shaped[0] + r[3 * c + 1] * shaped[1]
          + r[3 * c + 2] * shaped[2] + tm[c] * w for c in range(3)]

    # Camera: affine extrinsic rows + perspective projection.
    cam = [e[4 * c] * p3[0] + e[4 * c + 1] * p3[1]
           + e[4 * c + 2] * p3[2] + e[4 * c + 3] for c in range(3)]
    inv_z = pl.reciprocal(cam[2], approx=True)                 # EUP slot
    inv_z = inv_z * (2.0 - cam[2] * inv_z)                     # one Newton step
    px = fx * (cam[0] * inv_z) + cx
    py = fy * (cam[1] * inv_z) + cy

    for c in range(3):
        p3d_ref[c] = p3[c]
    p2d_ref[0] = px
    p2d_ref[1] = py


# ---------------------------------------------------------------------------
# Glue: Rodrigues, joint-regressor folding, slab layout, padding.
# ---------------------------------------------------------------------------
def rodrigues(rvec):
    """(N, 3) axis-angle -> (N, 3, 3) rotation matrices."""
    eps = 1e-8
    theta = jnp.sqrt(jnp.sum(rvec * rvec, axis=-1, keepdims=True) + eps)
    k = rvec / theta
    kx, ky, kz = k[:, 0], k[:, 1], k[:, 2]
    z = jnp.zeros_like(kx)
    K = jnp.stack([jnp.stack([z, -kz, ky], -1),
                   jnp.stack([kz, z, -kx], -1),
                   jnp.stack([-ky, kx, z], -1)], axis=1)
    s = jnp.sin(theta)[:, :, None]
    c = jnp.cos(theta)[:, :, None]
    eye = jnp.eye(3, dtype=rvec.dtype)[None]
    return eye + s * K + (1.0 - c) * jnp.matmul(K, K)


def smplx_parameters_forward(data, camera, model, mask):
    betas = data['betas'].astype(jnp.float32)                  # (N, B)
    transl = data['transl'].astype(jnp.float32)                # (N, 3)
    global_orient = data['global_orient'].astype(jnp.float32)  # (N, 3)

    N, B = betas.shape
    V = model['v_template'].shape[0]
    NJ = model['j_regressor'].shape[0]

    Vp = _round_up(V, 128)        # lane-dense vertex sub-slab
    NJp = _round_up(NJ, 128)      # lane-dense joint sub-slab

    # Lane tiling of the unified vertex+joint slab: per-step working set is
    # O(TF*LT), independent of V, so no VMEM spills at real SMPLX sizes.
    LT = min(512, Vp + NJp)
    Kp = _round_up(Vp + NJp, LT)

    # Frame tile: multiple of 8 sublanes. Per-step footprint at TF=64, LT=512 is
    # ~1.5 MB (double-buffered), fine on v5e/v6e (128 MiB) and v7x (64 MiB)
    # without raising vmem_limit_bytes.
    # TODO(synk): for awkward N a smaller tail block would avoid writing up to
    # TF-1 padded NaN frames to HBM.
    TF = min(64, _round_up(N, 8))
    Np = _round_up(N, TF)

    # ---- fold the joint regressor out of the kernel (affine rows) ----------
    jreg = model['j_regressor'].astype(jnp.float32)            # (NJ, V)
    vt = model['v_template'].astype(jnp.float32)               # (V, 3)
    sd = model['shapedirs'].astype(jnp.float32)                # (V, 3, B)
    jt = jnp.einsum('jv,vc->jc', jreg, vt, precision='highest')        # (NJ, 3)
    jsd = jnp.einsum('jv,vcb->jcb', jreg, sd, precision='highest')     # (NJ, 3, B)
    rowsum = jnp.sum(jreg, axis=1)                                     # (NJ,)

    # Unified lane slab layout: [vertices (Vp lanes) | joints (NJp lanes) | pad]
    sd_all = jnp.zeros((3, B, Kp), jnp.float32)
    sd_all = sd_all.at[:, :, :V].set(jnp.transpose(sd, (1, 2, 0)))
    sd_all = sd_all.at[:, :, Vp:Vp + NJ].set(jnp.transpose(jsd, (1, 2, 0)))
    sd_all = sd_all.astype(jnp.bfloat16)   # blend deltas are small vs f32 template

    templ = jnp.zeros((3, 1, Kp), jnp.float32)
    templ = templ.at[:, 0, :V].set(vt.T)
    templ = templ.at[:, 0, Vp:Vp + NJ].set(jt.T)

    weight = jnp.zeros((1, Kp), jnp.float32)
    weight = weight.at[0, :Vp].set(1.0)               # vertex lanes: + t
    weight = weight.at[0, Vp:Vp + NJ].set(rowsum)     # joint lanes:  + t * (J @ 1)

    # Packed per-frame parameters: one lane-padded block per frame tile.
    rot = rodrigues(global_orient).reshape(N, 9)
    extr = jnp.asarray(camera['extrinsics'], jnp.float32)
    if extr.ndim == 2:
        extr = jnp.broadcast_to(extr[None], (N, 4, 4))
    extr34 = extr[:, :3, :].reshape(N, 12)
    intr = jnp.asarray(camera['intrinsics'], jnp.float32)

    params = jnp.zeros((N, _PCOLS), jnp.float32)
    params = params.at[:, _ROT0:_ROT0 + 9].set(rot)
    params = params.at[:, _TR0:_TR0 + 3].set(transl)
    params = params.at[:, _EXT0:_EXT0 + 12].set(extr34)
    params = params.at[:, _MASK].set(mask.astype(jnp.float32))
    params = params.at[:, _FX].set(intr[0, 0])
    params = params.at[:, _FY].set(intr[1, 1])
    params = params.at[:, _CX].set(intr[0, 2])
    params = params.at[:, _CY].set(intr[1, 2])

    def pad_frames(x):
        return jnp.pad(x, [(0, Np - N)] + [(0, 0)] * (x.ndim - 1))

    betas_p = pad_frames(betas).astype(jnp.bfloat16)
    params_p = pad_frames(params)    # padded frames get mask=0 -> NaN, sliced off

    grid = (Np // TF, Kp // LT)
    out_shapes = (
        jax.ShapeDtypeStruct((3, Np, Kp), jnp.float32),
        jax.ShapeDtypeStruct((2, Np, Kp), jnp.float32),
    )
    in_specs = [
        pl.BlockSpec((TF, B), lambda i, j: (i, 0)),            # betas (bf16)
        pl.BlockSpec((3, B, LT), lambda i, j: (0, 0, j)),      # blend-dir chunk
        pl.BlockSpec((3, 1, LT), lambda i, j: (0, 0, j)),      # template chunk
        pl.BlockSpec((1, LT), lambda i, j: (0, j)),            # translation weight
        pl.BlockSpec((TF, _PCOLS), lambda i, j: (i, 0)),       # packed per-frame params
    ]
    out_specs = (
        pl.BlockSpec((3, TF, LT), lambda i, j: (0, i, j)),
        pl.BlockSpec((2, TF, LT), lambda i, j: (0, i, j)),
    )

    p3d_f, p2d_f = pl.pallas_call(
        _smplx_kernel,
        out_shape=out_shapes,
        grid=grid,
        in_specs=in_specs,
        out_specs=out_specs,
        compiler_params=pltpu.CompilerParams(
            dimension_semantics=("parallel", "parallel")),
    )(betas_p, sd_all, templ, weight, params_p)

    # Repack coordinate-major (C, N, Kp) kernel outputs into the (N, K, C)
    # layout of the original module.
    # TODO(synk): returning the coordinate-major buffers directly would avoid
    # this extra XLA transpose (an additional HBM read+write of every output)
    # if downstream consumers allowed it.
    def unpack(x, k0, k1):
        return jnp.transpose(x[:, :N, k0:k1], (1, 2, 0))

    v3d = unpack(p3d_f, 0, V)
    j3d = unpack(p3d_f, Vp, Vp + NJ)
    v2d = unpack(p2d_f, 0, V)
    j2d = unpack(p2d_f, Vp, Vp + NJ)

    return {
        'v3d': v3d, 'v2d': v2d, 'j3d': j3d, 'j2d': j2d,
        'betas': data['betas'],
        'smplx_transl': data['transl'],
        'smplx_global_orient': data['global_orient'],
        'smplx_body_pose': data['body_pose'],
        'smplx_left_hand_pose': data['left_hand_pose'],
        'smplx_right_hand_pose': data['right_hand_pose'],
    }


# ---------------------------------------------------------------------------
# Pure-JAX reference (same simplified SMPLX + project2d) for verification.
# ---------------------------------------------------------------------------
def _reference_forward(data, camera, model, mask):
    betas = data['betas']
    transl = data['transl']
    rot = rodrigues(data['global_orient'])                              # (N,3,3)
    blend = jnp.einsum('vdk,nk->nvd', model['shapedirs'], betas,
                       precision='highest')                             # (N,V,3)
    v_shaped = model['v_template'][None] + blend
    v3d = jnp.einsum('nij,nvj->nvi', rot, v_shaped,
                     precision='highest') + transl[:, None, :]
    j3d = jnp.einsum('jv,nvd->njd', model['j_regressor'], v3d,
                     precision='highest')

    intr = camera['intrinsics']
    extr = camera['extrinsics']

    def project2d(pts):
        ones = jnp.ones_like(pts[..., :1])
        homo = jnp.concatenate([pts, ones], axis=-1)
        e = extr[None] if extr.ndim == 2 else extr
        cam = jnp.einsum('nij,nkj->nki',
                         jnp.broadcast_to(e, (pts.shape[0], 4, 4)), homo,
                         precision='highest')
        cam = cam[..., :3]
        x = cam[..., 0] / cam[..., 2]
        y = cam[..., 1] / cam[..., 2]
        px = intr[0, 0] * x + intr[0, 2]
        py = intr[1, 1] * y + intr[1, 2]
        return jnp.stack([px, py], axis=-1)

    nanf = jnp.float32(jnp.nan)
    m = mask[:, None, None]
    return {
        'v3d': jnp.where(m, v3d, nanf),
        'j3d': jnp.where(m, j3d, nanf),
        'v2d': jnp.where(m, project2d(v3d), nanf),
        'j2d': jnp.where(m, project2d(j3d), nanf),
    }


if __name__ == "__main__":
    key = jax.random.PRNGKey(0)
    ks = jax.random.split(key, 10)

    N, V, NJ, B = 4, 64, 55, 10      # small synthetic sizes (real SMPLX: V=10475)

    data = {
        'betas': 0.1 * jax.random.normal(ks[0], (N, B), jnp.float32),
        'transl': 0.1 * jax.random.normal(ks[1], (N, 3), jnp.float32)
                  + jnp.array([0.0, 0.0, 3.0], jnp.float32),
        'global_orient': 0.2 * jax.random.normal(ks[2], (N, 3), jnp.float32),
        'body_pose': 0.1 * jax.random.normal(ks[3], (N, 63), jnp.float32),
        'left_hand_pose': 0.1 * jax.random.normal(ks[4], (N, 45), jnp.float32),
        'right_hand_pose': 0.1 * jax.random.normal(ks[5], (N, 45), jnp.float32),
    }
    camera = {
        'intrinsics': jnp.array([[500.0, 0.0, 320.0],
                                 [0.0, 500.0, 240.0],
                                 [0.0, 0.0, 1.0]], jnp.float32),
        'extrinsics': jnp.eye(4, dtype=jnp.float32),
    }
    model = {   # deterministic synthetic SMPLX stand-in parameters
        'v_template': 0.3 * jax.random.normal(ks[6], (V, 3), jnp.float32),
        'shapedirs': 0.01 * jax.random.normal(ks[7], (V, 3, B), jnp.float32),
        'j_regressor': jax.nn.softmax(
            jax.random.normal(ks[8], (NJ, V), jnp.float32), axis=-1),
    }
    mask = jnp.array([True, False, True, True])

    out = smplx_parameters_forward(data, camera, model, mask)
    out = jax.block_until_ready(out)

    ref = _reference_forward(data, camera, model, mask)
    for name in ('v3d', 'j3d', 'v2d', 'j2d'):
        np.testing.assert_allclose(np.asarray(out[name]), np.asarray(ref[name]),
                                   rtol=1e-4, atol=1e-3)

    print("KERNEL_OK")
</pallas_src>

<mosaic_0001>
module attributes {stable_mosaic.version = 11 : i64} {
  func.func @_smplx_kernel(%arg0: i32, %arg1: i32, %arg2: memref<8x10xbf16, #tpu.memory_space<vmem>>, %arg3: memref<3x10x256xbf16, #tpu.memory_space<vmem>>, %arg4: memref<3x1x256xf32, #tpu.memory_space<vmem>>, %arg5: memref<1x256xf32, #tpu.memory_space<vmem>>, %arg6: memref<8x128xf32, #tpu.memory_space<vmem>>, %arg7: memref<3x8x256xf32, #tpu.memory_space<vmem>>, %arg8: memref<2x8x256xf32, #tpu.memory_space<vmem>>) attributes {dimension_semantics = [#tpu.dimension_semantics<parallel>, #tpu.dimension_semantics<parallel>], iteration_bounds = array<i64: 1, 1>, scalar_prefetch = 0 : i64, scratch_operands = 0 : i64, tpu.core_type = #tpu.core_type<tc>, window_params = [{transform_indices = @transform_0, window_bounds = array<i64: 8, 10>}, {transform_indices = @transform_1, window_bounds = array<i64: 3, 10, 256>}, {transform_indices = @transform_2, window_bounds = array<i64: 3, 1, 256>}, {transform_indices = @transform_3, window_bounds = array<i64: 1, 256>}, {transform_indices = @transform_4, window_bounds = array<i64: 8, 128>}, {transform_indices = @transform_5, window_bounds = array<i64: 3, 8, 256>}, {transform_indices = @transform_6, window_bounds = array<i64: 2, 8, 256>}]} {
    %c0 = arith.constant 0 : index
    %c0_0 = arith.constant 0 : index
    %0 = vector.load %arg2[%c0, %c0_0] : memref<8x10xbf16, #tpu.memory_space<vmem>>, vector<8x10xbf16>
    %c0_1 = arith.constant 0 : index
    %c0_2 = arith.constant 0 : index
    %1 = vector.load %arg6[%c0_1, %c0_2] : memref<8x128xf32, #tpu.memory_space<vmem>>, vector<8x128xf32>
    %c0_3 = arith.constant 0 : index
    %c0_4 = arith.constant 0 : index
    %2 = vector.load %arg5[%c0_3, %c0_4] : memref<1x256xf32, #tpu.memory_space<vmem>>, vector<1x256xf32>
    %3 = vector.extract_strided_slice %1 {offsets = [0, 0], sizes = [8, 1], strides = [1, 1]} : vector<8x128xf32> to vector<8x1xf32>
    %4 = vector.extract_strided_slice %1 {offsets = [0, 1], sizes = [8, 1], strides = [1, 1]} : vector<8x128xf32> to vector<8x1xf32>
    %5 = vector.extract_strided_slice %1 {offsets = [0, 2], sizes = [8, 1], strides = [1, 1]} : vector<8x128xf32> to vector<8x1xf32>
    %6 = vector.extract_strided_slice %1 {offsets = [0, 3], sizes = [8, 1], strides = [1, 1]} : vector<8x128xf32> to vector<8x1xf32>
    %7 = vector.extract_strided_slice %1 {offsets = [0, 4], sizes = [8, 1], strides = [1, 1]} : vector<8x128xf32> to vector<8x1xf32>
    %8 = vector.extract_strided_slice %1 {offsets = [0, 5], sizes = [8, 1], strides = [1, 1]} : vector<8x128xf32> to vector<8x1xf32>
    %9 = vector.extract_strided_slice %1 {offsets = [0, 6], sizes = [8, 1], strides = [1, 1]} : vector<8x128xf32> to vector<8x1xf32>
    %10 = vector.extract_strided_slice %1 {offsets = [0, 7], sizes = [8, 1], strides = [1, 1]} : vector<8x128xf32> to vector<8x1xf32>
    %11 = vector.extract_strided_slice %1 {offsets = [0, 8], sizes = [8, 1], strides = [1, 1]} : vector<8x128xf32> to vector<8x1xf32>
    %12 = vector.extract_strided_slice %1 {offsets = [0, 9], sizes = [8, 1], strides = [1, 1]} : vector<8x128xf32> to vector<8x1xf32>
    %13 = vector.extract_strided_slice %1 {offsets = [0, 10], sizes = [8, 1], strides = [1, 1]} : vector<8x128xf32> to vector<8x1xf32>
    %14 = vector.extract_strided_slice %1 {offsets = [0, 11], sizes = [8, 1], strides = [1, 1]} : vector<8x128xf32> to vector<8x1xf32>
    %15 = vector.extract_strided_slice %1 {offsets = [0, 12], sizes = [8, 1], strides = [1, 1]} : vector<8x128xf32> to vector<8x1xf32>
    %16 = vector.extract_strided_slice %1 {offsets = [0, 13], sizes = [8, 1], strides = [1, 1]} : vector<8x128xf32> to vector<8x1xf32>
    %17 = vector.extract_strided_slice %1 {offsets = [0, 14], sizes = [8, 1], strides = [1, 1]} : vector<8x128xf32> to vector<8x1xf32>
    %18 = vector.extract_strided_slice %1 {offsets = [0, 15], sizes = [8, 1], strides = [1, 1]} : vector<8x128xf32> to vector<8x1xf32>
    %19 = vector.extract_strided_slice %1 {offsets = [0, 16], sizes = [8, 1], strides = [1, 1]} : vector<8x128xf32> to vector<8x1xf32>
    %20 = vector.extract_strided_slice %1 {offsets = [0, 17], sizes = [8, 1], strides = [1, 1]} : vector<8x128xf32> to vector<8x1xf32>
    %21 = vector.extract_strided_slice %1 {offsets = [0, 18], sizes = [8, 1], strides = [1, 1]} : vector<8x128xf32> to vector<8x1xf32>
    %22 = vector.extract_strided_slice %1 {offsets = [0, 19], sizes = [8, 1], strides = [1, 1]} : vector<8x128xf32> to vector<8x1xf32>
    %23 = vector.extract_strided_slice %1 {offsets = [0, 20], sizes = [8, 1], strides = [1, 1]} : vector<8x128xf32> to vector<8x1xf32>
    %24 = vector.extract_strided_slice %1 {offsets = [0, 21], sizes = [8, 1], strides = [1, 1]} : vector<8x128xf32> to vector<8x1xf32>
    %25 = vector.extract_strided_slice %1 {offsets = [0, 22], sizes = [8, 1], strides = [1, 1]} : vector<8x128xf32> to vector<8x1xf32>
    %26 = vector.extract_strided_slice %1 {offsets = [0, 23], sizes = [8, 1], strides = [1, 1]} : vector<8x128xf32> to vector<8x1xf32>
    %27 = vector.extract_strided_slice %1 {offsets = [0, 24], sizes = [8, 1], strides = [1, 1]} : vector<8x128xf32> to vector<8x1xf32>
    %cst = arith.constant 5.000000e-01 : f32
    %28 = vector.broadcast %cst : f32 to vector<8x1xf32>
    %29 = arith.cmpf ogt, %27, %28 : vector<8x1xf32>
    %30 = vector.extract_strided_slice %1 {offsets = [0, 25], sizes = [8, 1], strides = [1, 1]} : vector<8x128xf32> to vector<8x1xf32>
    %31 = vector.extract_strided_slice %1 {offsets = [0, 26], sizes = [8, 1], strides = [1, 1]} : vector<8x128xf32> to vector<8x1xf32>
    %32 = vector.extract_strided_slice %1 {offsets = [0, 27], sizes = [8, 1], strides = [1, 1]} : vector<8x128xf32> to vector<8x1xf32>
    %33 = vector.extract_strided_slice %1 {offsets = [0, 28], sizes = [8, 1], strides = [1, 1]} : vector<8x128xf32> to vector<8x1xf32>
    %cst_5 = arith.constant 0x7FC00000 : f32
    %34 = vector.broadcast %cst_5 : f32 to vector<8x1xf32>
    %35 = arith.select %29, %12, %34 : vector<8x1xi1>, vector<8x1xf32>
    %cst_6 = arith.constant 0x7FC00000 : f32
    %36 = vector.broadcast %cst_6 : f32 to vector<8x1xf32>
    %37 = arith.select %29, %13, %36 : vector<8x1xi1>, vector<8x1xf32>
    %cst_7 = arith.constant 0x7FC00000 : f32
    %38 = vector.broadcast %cst_7 : f32 to vector<8x1xf32>
    %39 = arith.select %29, %14, %38 : vector<8x1xi1>, vector<8x1xf32>
    %c0_8 = arith.constant 0 : index
    %c0_9 = arith.constant 0 : index
    %c0_10 = arith.constant 0 : index
    %40 = vector.load %arg3[%c0_8, %c0_9, %c0_10] : memref<3x10x256xbf16, #tpu.memory_space<vmem>>, vector<1x10x256xbf16>
    %41 = vector.shape_cast %40 : vector<1x10x256xbf16> to vector<10x256xbf16>
    %cst_11 = arith.constant dense<0.000000e+00> : vector<8x256xf32>
    %42 = tpu.matmul %0, %41, %cst_11 {dimension_numbers = #tpu.dot_dimension_numbers<[1], [0], [0], [1], [0, 0, 1, 1], [], []>} : vector<8x10xbf16>, vector<10x256xbf16>, vector<8x256xf32> -> vector<8x256xf32>
    %c0_12 = arith.constant 0 : index
    %c0_13 = arith.constant 0 : index
    %c0_14 = arith.constant 0 : index
    %43 = vector.load %arg4[%c0_12, %c0_13, %c0_14] : memref<3x1x256xf32, #tpu.memory_space<vmem>>, vector<1x1x256xf32>
    %44 = vector.shape_cast %43 : vector<1x1x256xf32> to vector<1x256xf32>
    %45 = vector.broadcast %44 : vector<1x256xf32> to vector<8x256xf32>
    %46 = arith.addf %42, %45 : vector<8x256xf32>
    %c1 = arith.constant 1 : index
    %c0_15 = arith.constant 0 : index
    %c0_16 = arith.constant 0 : index
    %47 = vector.load %arg3[%c1, %c0_15, %c0_16] : memref<3x10x256xbf16, #tpu.memory_space<vmem>>, vector<1x10x256xbf16>
    %48 = vector.shape_cast %47 : vector<1x10x256xbf16> to vector<10x256xbf16>
    %cst_17 = arith.constant dense<0.000000e+00> : vector<8x256xf32>
    %49 = tpu.matmul %0, %48, %cst_17 {dimension_numbers = #tpu.dot_dimension_numbers<[1], [0], [0], [1], [0, 0, 1, 1], [], []>} : vector<8x10xbf16>, vector<10x256xbf16>, vector<8x256xf32> -> vector<8x256xf32>
    %c1_18 = arith.constant 1 : index
    %c0_19 = arith.constant 0 : index
    %c0_20 = arith.constant 0 : index
    %50 = vector.load %arg4[%c1_18, %c0_19, %c0_20] : memref<3x1x256xf32, #tpu.memory_space<vmem>>, vector<1x1x256xf32>
    %51 = vector.shape_cast %50 : vector<1x1x256xf32> to vector<1x256xf32>
    %52 = vector.broadcast %51 : vector<1x256xf32> to vector<8x256xf32>
    %53 = arith.addf %49, %52 : vector<8x256xf32>
    %c2 = arith.constant 2 : index
    %c0_21 = arith.constant 0 : index
    %c0_22 = arith.constant 0 : index
    %54 = vector.load %arg3[%c2, %c0_21, %c0_22] : memref<3x10x256xbf16, #tpu.memory_space<vmem>>, vector<1x10x256xbf16>
    %55 = vector.shape_cast %54 : vector<1x10x256xbf16> to vector<10x256xbf16>
    %cst_23 = arith.constant dense<0.000000e+00> : vector<8x256xf32>
    %56 = tpu.matmul %0, %55, %cst_23 {dimension_numbers = #tpu.dot_dimension_numbers<[1], [0], [0], [1], [0, 0, 1, 1], [], []>} : vector<8x10xbf16>, vector<10x256xbf16>, vector<8x256xf32> -> vector<8x256xf32>
    %c2_24 = arith.constant 2 : index
    %c0_25 = arith.constant 0 : index
    %c0_26 = arith.constant 0 : index
    %57 = vector.load %arg4[%c2_24, %c0_25, %c0_26] : memref<3x1x256xf32, #tpu.memory_space<vmem>>, vector<1x1x256xf32>
    %58 = vector.shape_cast %57 : vector<1x1x256xf32> to vector<1x256xf32>
    %59 = vector.broadcast %58 : vector<1x256xf32> to vector<8x256xf32>
    %60 = arith.addf %56, %59 : vector<8x256xf32>
    %61 = vector.broadcast %3 : vector<8x1xf32> to vector<8x256xf32>
    %62 = arith.mulf %61, %46 : vector<8x256xf32>
    %63 = vector.broadcast %4 : vector<8x1xf32> to vector<8x256xf32>
    %64 = arith.mulf %63, %53 : vector<8x256xf32>
    %65 = arith.addf %62, %64 : vector<8x256xf32>
    %66 = vector.broadcast %5 : vector<8x1xf32> to vector<8x256xf32>
    %67 = arith.mulf %66, %60 : vector<8x256xf32>
    %68 = arith.addf %65, %67 : vector<8x256xf32>
    %69 = vector.broadcast %35 : vector<8x1xf32> to vector<8x256xf32>
    %70 = vector.broadcast %2 : vector<1x256xf32> to vector<8x256xf32>
    %71 = arith.mulf %69, %70 : vector<8x256xf32>
    %72 = arith.addf %68, %71 : vector<8x256xf32>
    %73 = vector.broadcast %6 : vector<8x1xf32> to vector<8x256xf32>
    %74 = arith.mulf %73, %46 : vector<8x256xf32>
    %75 = vector.broadcast %7 : vector<8x1xf32> to vector<8x256xf32>
    %76 = arith.mulf %75, %53 : vector<8x256xf32>
    %77 = arith.addf %74, %76 : vector<8x256xf32>
    %78 = vector.broadcast %8 : vector<8x1xf32> to vector<8x256xf32>
    %79 = arith.mulf %78, %60 : vector<8x256xf32>
    %80 = arith.addf %77, %79 : vector<8x256xf32>
    %81 = vector.broadcast %37 : vector<8x1xf32> to vector<8x256xf32>
    %82 = vector.broadcast %2 : vector<1x256xf32> to vector<8x256xf32>
    %83 = arith.mulf %81, %82 : vector<8x256xf32>
    %84 = arith.addf %80, %83 : vector<8x256xf32>
    %85 = vector.broadcast %9 : vector<8x1xf32> to vector<8x256xf32>
    %86 = arith.mulf %85, %46 : vector<8x256xf32>
    %87 = vector.broadcast %10 : vector<8x1xf32> to vector<8x256xf32>
    %88 = arith.mulf %87, %53 : vector<8x256xf32>
    %89 = arith.addf %86, %88 : vector<8x256xf32>
    %90 = vector.broadcast %11 : vector<8x1xf32> to vector<8x256xf32>
    %91 = arith.mulf %90, %60 : vector<8x256xf32>
    %92 = arith.addf %89, %91 : vector<8x256xf32>
    %93 = vector.broadcast %39 : vector<8x1xf32> to vector<8x256xf32>
    %94 = vector.broadcast %2 : vector<1x256xf32> to vector<8x256xf32>
    %95 = arith.mulf %93, %94 : vector<8x256xf32>
    %96 = arith.addf %92, %95 : vector<8x256xf32>
    %97 = vector.broadcast %15 : vector<8x1xf32> to vector<8x256xf32>
    %98 = arith.mulf %97, %72 : vector<8x256xf32>
    %99 = vector.broadcast %16 : vector<8x1xf32> to vector<8x256xf32>
    %100 = arith.mulf %99, %84 : vector<8x256xf32>
    %101 = arith.addf %98, %100 : vector<8x256xf32>
    %102 = vector.broadcast %17 : vector<8x1xf32> to vector<8x256xf32>
    %103 = arith.mulf %102, %96 : vector<8x256xf32>
    %104 = arith.addf %101, %103 : vector<8x256xf32>
    %105 = vector.broadcast %18 : vector<8x1xf32> to vector<8x256xf32>
    %106 = arith.addf %104, %105 : vector<8x256xf32>
    %107 = vector.broadcast %19 : vector<8x1xf32> to vector<8x256xf32>
    %108 = arith.mulf %107, %72 : vector<8x256xf32>
    %109 = vector.broadcast %20 : vector<8x1xf32> to vector<8x256xf32>
    %110 = arith.mulf %109, %84 : vector<8x256xf32>
    %111 = arith.addf %108, %110 : vector<8x256xf32>
    %112 = vector.broadcast %21 : vector<8x1xf32> to vector<8x256xf32>
    %113 = arith.mulf %112, %96 : vector<8x256xf32>
    %114 = arith.addf %111, %113 : vector<8x256xf32>
    %115 = vector.broadcast %22 : vector<8x1xf32> to vector<8x256xf32>
    %116 = arith.addf %114, %115 : vector<8x256xf32>
    %117 = vector.broadcast %23 : vector<8x1xf32> to vector<8x256xf32>
    %118 = arith.mulf %117, %72 : vector<8x256xf32>
    %119 = vector.broadcast %24 : vector<8x1xf32> to vector<8x256xf32>
    %120 = arith.mulf %119, %84 : vector<8x256xf32>
    %121 = arith.addf %118, %120 : vector<8x256xf32>
    %122 = vector.broadcast %25 : vector<8x1xf32> to vector<8x256xf32>
    %123 = arith.mulf %122, %96 : vector<8x256xf32>
    %124 = arith.addf %121, %123 : vector<8x256xf32>
    %125 = vector.broadcast %26 : vector<8x1xf32> to vector<8x256xf32>
    %126 = arith.addf %124, %125 : vector<8x256xf32>
    %127 = tpu.reciprocal %126 {approx = true} : vector<8x256xf32> -> vector<8x256xf32>
    %128 = arith.mulf %126, %127 : vector<8x256xf32>
    %cst_27 = arith.constant 2.000000e+00 : f32
    %129 = vector.broadcast %cst_27 : f32 to vector<8x256xf32>
    %130 = arith.subf %129, %128 : vector<8x256xf32>
    %131 = arith.mulf %127, %130 : vector<8x256xf32>
    %132 = arith.mulf %106, %131 : vector<8x256xf32>
    %133 = vector.broadcast %30 : vector<8x1xf32> to vector<8x256xf32>
    %134 = arith.mulf %133, %132 : vector<8x256xf32>
    %135 = vector.broadcast %32 : vector<8x1xf32> to vector<8x256xf32>
    %136 = arith.addf %134, %135 : vector<8x256xf32>
    %137 = arith.mulf %116, %131 : vector<8x256xf32>
    %138 = vector.broadcast %31 : vector<8x1xf32> to vector<8x256xf32>
    %139 = arith.mulf %138, %137 : vector<8x256xf32>
    %140 = vector.broadcast %33 : vector<8x1xf32> to vector<8x256xf32>
    %141 = arith.addf %139, %140 : vector<8x256xf32>
    %c0_28 = arith.constant 0 : index
    %c0_29 = arith.constant 0 : index
    %c0_30 = arith.constant 0 : index
    %142 = vector.load %arg7[%c0_28, %c0_29, %c0_30] : memref<3x8x256xf32, #tpu.memory_space<vmem>>, vector<1x8x256xf32>
    %143 = vector.shape_cast %142 : vector<1x8x256xf32> to vector<8x256xf32>
    %144 = vector.shape_cast %72 : vector<8x256xf32> to vector<1x8x256xf32>
    tpu.vector_store %arg7[%c0_28, %c0_29, %c0_30], %144 {strides = array<i32>} : memref<3x8x256xf32, #tpu.memory_space<vmem>>, vector<1x8x256xf32>,
    %c1_31 = arith.constant 1 : index
    %c0_32 = arith.constant 0 : index
    %c0_33 = arith.constant 0 : index
    %145 = vector.load %arg7[%c1_31, %c0_32, %c0_33] : memref<3x8x256xf32, #tpu.memory_space<vmem>>, vector<1x8x256xf32>
    %146 = vector.shape_cast %145 : vector<1x8x256xf32> to vector<8x256xf32>
    %147 = vector.shape_cast %84 : vector<8x256xf32> to vector<1x8x256xf32>
    tpu.vector_store %arg7[%c1_31, %c0_32, %c0_33], %147 {strides = array<i32>} : memref<3x8x256xf32, #tpu.memory_space<vmem>>, vector<1x8x256xf32>,
    %c2_34 = arith.constant 2 : index
    %c0_35 = arith.constant 0 : index
    %c0_36 = arith.constant 0 : index
    %148 = vector.load %arg7[%c2_34, %c0_35, %c0_36] : memref<3x8x256xf32, #tpu.memory_space<vmem>>, vector<1x8x256xf32>
    %149 = vector.shape_cast %148 : vector<1x8x256xf32> to vector<8x256xf32>
    %150 = vector.shape_cast %96 : vector<8x256xf32> to vector<1x8x256xf32>
    tpu.vector_store %arg7[%c2_34, %c0_35, %c0_36], %150 {strides = array<i32>} : memref<3x8x256xf32, #tpu.memory_space<vmem>>, vector<1x8x256xf32>,
    %c0_37 = arith.constant 0 : index
    %c0_38 = arith.constant 0 : index
    %c0_39 = arith.constant 0 : index
    %151 = vector.load %arg8[%c0_37, %c0_38, %c0_39] : memref<2x8x256xf32, #tpu.memory_space<vmem>>, vector<1x8x256xf32>
    %152 = vector.shape_cast %151 : vector<1x8x256xf32> to vector<8x256xf32>
    %153 = vector.shape_cast %136 : vector<8x256xf32> to vector<1x8x256xf32>
    tpu.vector_store %arg8[%c0_37, %c0_38, %c0_39], %153 {strides = array<i32>} : memref<2x8x256xf32, #tpu.memory_space<vmem>>, vector<1x8x256xf32>,
    %c1_40 = arith.constant 1 : index
    %c0_41 = arith.constant 0 : index
    %c0_42 = arith.constant 0 : index
    %154 = vector.load %arg8[%c1_40, %c0_41, %c0_42] : memref<2x8x256xf32, #tpu.memory_space<vmem>>, vector<1x8x256xf32>
    %155 = vector.shape_cast %154 : vector<1x8x256xf32> to vector<8x256xf32>
    %156 = vector.shape_cast %141 : vector<8x256xf32> to vector<1x8x256xf32>
    tpu.vector_store %arg8[%c1_40, %c0_41, %c0_42], %156 {strides = array<i32>} : memref<2x8x256xf32, #tpu.memory_space<vmem>>, vector<1x8x256xf32>,
    return
  }
  func.func @transform_0(%arg0: i32, %arg1: i32) -> (i32, i32) {
    %c0_i32 = arith.constant 0 : i32
    %c0_i32_0 = arith.constant 0 : i32
    return %arg0, %c0_i32 : i32, i32
  }
  func.func @transform_1(%arg0: i32, %arg1: i32) -> (i32, i32, i32) {
    %c0_i32 = arith.constant 0 : i32
    %c0_i32_0 = arith.constant 0 : i32
    %c0_i32_1 = arith.constant 0 : i32
    return %c0_i32, %c0_i32_0, %arg1 : i32, i32, i32
  }
  func.func @transform_2(%arg0: i32, %arg1: i32) -> (i32, i32, i32) {
    %c0_i32 = arith.constant 0 : i32
    %c0_i32_0 = arith.constant 0 : i32
    %c0_i32_1 = arith.constant 0 : i32
    return %c0_i32, %c0_i32_0, %arg1 : i32, i32, i32
  }
  func.func @transform_3(%arg0: i32, %arg1: i32) -> (i32, i32) {
    %c0_i32 = arith.constant 0 : i32
    %c0_i32_0 = arith.constant 0 : i32
    return %c0_i32, %arg1 : i32, i32
  }
  func.func @transform_4(%arg0: i32, %arg1: i32) -> (i32, i32) {
    %c0_i32 = arith.constant 0 : i32
    %c0_i32_0 = arith.constant 0 : i32
    return %arg0, %c0_i32 : i32, i32
  }
  func.func @transform_5(%arg0: i32, %arg1: i32) -> (i32, i32, i32) {
    %c0_i32 = arith.constant 0 : i32
    %c0_i32_0 = arith.constant 0 : i32
    return %c0_i32, %arg0, %arg1 : i32, i32, i32
  }
  func.func @transform_6(%arg0: i32, %arg1: i32) -> (i32, i32, i32) {
    %c0_i32 = arith.constant 0 : i32
    %c0_i32_0 = arith.constant 0 : i32
    return %c0_i32, %arg0, %arg1 : i32, i32, i32
  }
}

</mosaic_0001>

<bundles_post_ra>
// kernel: tpu_custom_call.1
= control target key start
LH: loop header
LB: loop body
LE: loop exit
PB: predicated region body
PF: predicated region fallthrough
CT: control target
= control target key end

     0   :  { %12 = vsyncpa [#allocation3], 0  ;;  %vm68_vm0 = vcmask 1044480   ;;  %s662_s23 = smov 15   ;;  %vm64_vm1 = vcmask 80896   ;;  %s663_s9 = smov 14   ;;  %s838_s0 = inlined_call_operand.vmem [shape: bf16[8,10], index: 0, kind: input, shape index: {}]   ;;  %s839_s1 = inlined_call_operand.vmem [shape: bf16[3,10,256], index: 1, kind: input, shape index: {}]   ;;  %s840_s2 = inlined_call_operand.vmem [shape: f32[3,1,256], index: 2, kind: input, shape index: {}]   ;;  %s841_s3 = inlined_call_operand.vmem [shape: f32[1,256], index: 3, kind: input, shape index: {}]   ;;  %s842_s4 = inlined_call_operand.vmem [shape: f32[8,128], index: 4, kind: input, shape index: {}]   ;;  %s843_s5 = inlined_call_operand.hbm [shape: f32[3,8,256], index: 5, kind: output, shape index: {0}]   ;;  %s844_s6 = inlined_call_operand.hbm [shape: f32[2,8,256], index: 6, kind: output, shape index: {1}]  }
   0x1   :  { %v733_v0 = vld [vmem:[%s842_s4] sm:$0xff]  ;;  %v608_v3 = vld [vmem:[%s839_s1 + $0x14] ss:$8 sps:$4 sm:$0x1f]   ;;  %v664_v7 = vmov 0  }
   0x2   :  { %30 = vrot.lane.b32.xlu0 %v733_v0, %s662_s23  ;;  %v605_v1 = vld [vmem:[%s839_s1 + $0x4] ss:$8 sps:$4 sm:$0x1f]   ;;  %v607_v2 = vld [vmem:[%s839_s1] ss:$8 sps:$4 sm:$0x1f]   ;;  %536 = vmatprep.subr.msk.bf16.mxu1 %vm68_vm0, %v608_v3 }
   0x3   :  { %529 = vmatprep.subr.msk.bf16.mxu0 %vm68_vm0, %v605_v1  ;;  %v70_v4 = vsel %vm68_vm0, %v607_v2, 0  ;;  %v610_v5 = vld [vmem:[%s839_s1 + $0x10] ss:$8 sps:$4 sm:$0x1f]   ;;  %v25_v6 = vld [vmem:[%s838_s0] sm:$0xf]  ;;  %107 = vmatprep.mubr.bf16.mxu0 %v664_v7 }
   0x4   :  { %90 = vmatpush1.bf16.msra.mxu0 %v70_v4  ;;  %v141_v8 = vsel %vm68_vm0, %v610_v5, 0  ;;  %v611_v9 = vld [vmem:[%s839_s1 + $0x24] ss:$8 sps:$4 sm:$0x1f]   ;;  %178 = vmatprep.mubr.bf16.mxu1 %v664_v7  ;;  %s665_s0 = smov 13  }
   0x5   :  { %161 = vmatpush1.bf16.msra.mxu1 %v141_v8  ;;  %v613_v10 = vld [vmem:[%s839_s1 + $0x20] ss:$8 sps:$4 sm:$0x1f]   ;;  %38 = vrot.lane.b32.xlu1 %v733_v0, %s665_s0 }
   0x6   :  { %34 = vrot.lane.b32.xlu0 %v733_v0, %s663_s9 }
   0x7   :  { %530 = vmatmul.mubr.msk.bf16.vlgmr.msra.gmra.mxu0 %vm64_vm1, %v25_v6 }
   0x8   :  { %13 = vsyncpa [#allocation5], 0  ;;  %543 = vmatprep.subr.msk.bf16.mxu0 %vm68_vm0, %v611_v9  ;;  %v212_v11 = vsel %vm68_vm0, %v613_v10, 0  ;;  %249 = vmatprep.mubr.bf16.mxu0 %v664_v7  ;;  %v666_v12 = vmov 1   ;;  %v667_v13 = vmov 3   ;;  %v668_v14 = vmov 2  }
   0x9   :  { %537 = vmatmul.mubr.msk.bf16.vlgmr.msra.gmra.mxu1 %vm64_vm1, %v25_v6  ;;  %232 = vmatpush1.bf16.msra.mxu0 %v212_v11  ;;  %v669_v15 = vmov 4   ;;  %v670_v16 = vmov 7   ;;  %v671_v17 = vmov 5   ;;  %v672_v18 = vmov 8   ;;  %v44_v62 = vld [vmem:[%s840_s2] sm:$0x3] }
   0xa   :  { %578 = vset.pattern.permute.xlu1 %v664_v7  ;;  %579 = vset.pattern.permute.xlu0 %v666_v12  ;;  %v673_v19 = vmov 6   ;;  %v674_v20 = vmov 21   ;;  %v675_v21 = vmov 20   ;;  %v676_v22 = vmov 12   ;;  %v533_v63 = vld [vmem:[%s840_s2 + $0x2] sm:$0x3] }
   0xb   :  { %259 = vperm.xlu1 %578, %v733_v0   ;;  %265 = vperm.xlu0 %579, %v733_v0   ;;  %v677_v23 = vmov 22   ;;  %v678_v24 = vmov 17   ;;  %v679_v25 = vmov 24   ;;  %v680_v26 = vmov 15   ;;  %v540_v5 = vld [vmem:[%s840_s2 + $0x4] sm:$0x3] }
   0xc   :  { %v681_v27 = vmov 26   ;;  %v682_v28 = vmov 28   ;;  %vm28_vm2 = vcmp.gt.f32.partialorder %v733_v0, 0.5  ;;  %v683_v35 = vmov 23   ;;  %s691_s2 = smov [#allocation2]  }
   0xd   :  { %v684_v36 = vmov 13   ;;  %v685_v37 = vmov 16   ;;  %v686_v38 = vmov 14   ;;  %v687_v39 = vmov 18  }
   0xe   :  { %v688_v40 = vmov 19   ;;  %v689_v41 = vmov 25   ;;  %v690_v42 = vmov 27   ;;  %v46_v56 = vlaneseq }
   0xf   :  { %544 = vmatmul.mubr.msk.bf16.vlgmr.msra.gmra.mxu0 %vm64_vm1, %v25_v6  ;;  %580 = vset.pattern.permute.xlu1 %v667_v13 }
  0x10   :  { %301 = vperm.xlu1 %580, %v733_v0   ;;  %582 = vset.pattern.permute.xlu0 %v668_v14  ;;  %v47_v59 = vshrl.u32 %v46_v56, 7 }
  0x11   :  { %273 = vperm.xlu0 %582, %v733_v0  }
  0x12   :  { %v48_v61 = vsub.s32 0, %v47_v59  ;;  %v52_v1 = vsub.s32 1, %v47_v59 }
  0x14   :  { %581 = vset.pattern.permute.xlu1 %v669_v15  ;;  %v49_v2 = vrot.slane %v44_v62, %v48_v61  ;;  %v125_v3 = vrot.slane %v533_v63, %v48_v61  ;;  %v53_v6 = vrot.slane %v44_v62, %v52_v1  ;;  %v129_v7 = vrot.slane %v533_v63, %v52_v1 }
  0x15   :  { %307 = vperm.xlu1 %581, %v733_v0   ;;  %585 = vset.pattern.permute.xlu0 %v670_v16  ;;  %v196_v10 = vrot.slane %v540_v5, %v48_v61  ;;  %v200_v12 = vrot.slane %v540_v5, %v52_v1 }
  0x16   :  { %338 = vperm.xlu0 %585, %v733_v0  }
  0x19   :  { %583 = vset.pattern.permute.xlu1 %v671_v17 }
  0x1a   :  { %315 = vperm.xlu1 %583, %v733_v0   ;;  %586 = vset.pattern.permute.xlu0 %v672_v18 }
  0x1b   :  { %346 = vperm.xlu0 %586, %v733_v0  }
  0x1e   :  { %584 = vset.pattern.permute.xlu1 %v673_v19 }
  0x1f   :  { %332 = vperm.xlu1 %584, %v733_v0   ;;  %588 = vset.pattern.permute.xlu0 %v674_v20 }
  0x20   :  { %425 = vperm.xlu0 %588, %v733_v0  }
  0x23   :  { %587 = vset.pattern.permute.xlu1 %v675_v21  ;;  %v27_v21 = vld [vmem:[%s841_s3] sm:$0x3]  ;;  %s500_s3 = sshll.u32 %s691_s2, 4  ;;  %s501_s3 = int_to_ptr.vmem [resolvable:$true] %s500_s3 }
  0x24   :  { %419 = vperm.xlu1 %587, %v733_v0   ;;  %592 = vset.pattern.permute.xlu0 %v676_v22  ;;  %s618_s21 = scalar_lea.vmem %s501_s3, 768  ;;  %p623_p1 = scmp.lt.s32.totalorder %s501_s3, %s501_s3 }
  0x25   :  { %363 = vperm.xlu0 %592, %v733_v0   ;;  %p619_p0 = scmp.ne.s32.totalorder %s501_s3, %s618_s21  ;;  %p624_p2 = scmp.lt.s32.totalorder %s618_s21, %s618_s21 }
  0x27   :  { %p625_p3 = por %p624_p2, %p623_p1 }
  0x28   :  { %589 = vset.pattern.permute.xlu1 %v677_v23 }
  0x29   :  { %433 = vperm.xlu1 %589, %v733_v0   ;;  %595 = vset.pattern.permute.xlu0 %v678_v24  ;;  %p626_p4 = pnand %p625_p3, %p619_p0 }
  0x2a   :  { %397 = vperm.xlu0 %595, %v733_v0  }
  0x2d   :  { %590 = vset.pattern.permute.xlu1 %v679_v25 }
  0x2e   :  { %598 = vset.pattern.permute.xlu0 %v680_v26 }
  0x2f   :  { %385 = vperm.xlu0 %598, %v733_v0  }
  0x33   :  { %601 = vset.pattern.permute.xlu0 %v681_v27 }
  0x34   :  { %471 = vperm.xlu0 %601, %v733_v0  }
  0x38   :  { %604 = vset.pattern.permute.xlu0 %v682_v28 }
  0x74   :  { %v31_v29 = vpop.permute.xlu0 %30 }
  0x75   :  { %v33_v30 = vsel %vm28_vm2, %v31_v29, nan }
  0x76   :  { %282 = vperm.xlu1 %590, %v33_v30  }
  0x77   :  { %v39_v33 = vpop.permute.xlu1 %38 }
  0x78   :  { %v35_v31 = vpop.permute.xlu0 %34  ;;  %v41_v34 = vsel %vm28_vm2, %v39_v33, nan  ;;  %v293_v33 = vrot.slane %v27_v21, %v52_v1 }
  0x79   :  { %v37_v32 = vsel %vm28_vm2, %v35_v31, nan }
  0x7a   :  { %324 = vperm.xlu1 %590, %v37_v32   ;;  %v289_v32 = vrot.slane %v27_v21, %v48_v61 }
  0x7e   :  { %355 = vperm.xlu1 %590, %v41_v34  }
  0x82   :  { %591 = vset.pattern.permute.xlu1 %v683_v35 }
  0x83   :  { %441 = vperm.xlu1 %591, %v733_v0  }
  0x86   :  { %v260_v44 = vpop.permute.xlu1 %259  ;;  %v266_v4 = vpop.permute.xlu0 %265 }
  0x87   :  { %593 = vset.pattern.permute.xlu1 %v684_v36 }
  0x88   :  { %369 = vperm.xlu1 %593, %v733_v0  }
  0x8b   :  { %v302_v51 = vpop.permute.xlu1 %301 }
  0x8c   :  { %594 = vset.pattern.permute.xlu1 %v685_v37  ;;  %v274_v15 = vpop.permute.xlu0 %273 }
  0x8d   :  { %391 = vperm.xlu1 %594, %v733_v0  }
  0x90   :  { %v308_v57 = vpop.permute.xlu1 %307 }
  0x91   :  { %596 = vset.pattern.permute.xlu1 %v686_v38  ;;  %v339_v26 = vpop.permute.xlu0 %338 }
  0x92   :  { %377 = vperm.xlu1 %596, %v733_v0  }
  0x95   :  { %v316_v60 = vpop.permute.xlu1 %315 }
  0x96   :  { %597 = vset.pattern.permute.xlu1 %v687_v39 }
  0x97   :  { %405 = vperm.xlu1 %597, %v733_v0  }
  0x9b   :  { %599 = vset.pattern.permute.xlu1 %v688_v40 }
  0x9c   :  { %413 = vperm.xlu1 %599, %v733_v0  }
  0xa0   :  { %600 = vset.pattern.permute.xlu1 %v689_v41 }
  0xa1   :  { %457 = vperm.xlu1 %600, %v733_v0  }
  0xa5   :  { %602 = vset.pattern.permute.xlu1 %v690_v42 }
  0xa6   :  { %463 = vperm.xlu1 %602, %v733_v0  }
  0xaa   :  { %603 = vset.pattern.permute.xlu1 %v682_v28 }
  0xab   :  { %477 = vperm.xlu1 %603, %v733_v0   ;;  %v333_v0 = vpop.permute.xlu1 %332 }
  0xaf   :  { %v803_v11 = vpop.permute.xlu1 %419 }
  0xb3   :  { %v805_v20 = vpop.permute.xlu1 %433 }
  0xc7   :  { %v109_v43 = vpop.f32.mrf.mxu0 }
  0xc8   :  { %v110_v8 = vadd.f32 %v109_v43, %v49_v2 }
  0xc9   :  { %v111_v45 = vpop.f32.mrf.mxu0  ;;  %v180_v46 = vpop.f32.mrf.mxu1 }
  0xca   :  { %v181_v9 = vadd.f32 %v180_v46, %v125_v3  ;;  %v112_v13 = vadd.f32 %v111_v45, %v53_v6  ;;  %v262_v16 = vmul.f32 %v260_v44, %v110_v8  ;;  %v304_v23 = vmul.f32 %v302_v51, %v110_v8  ;;  %v347_v45 = vpop.permute.xlu0 %346 }
  0xcb   :  { %v113_v47 = vpop.f32.mrf.mxu0  ;;  %v182_v48 = vpop.f32.mrf.mxu1  ;;  %v335_v34 = vmul.f32 %v333_v0, %v110_v8 }
  0xcc   :  { %v183_v14 = vadd.f32 %v182_v48, %v129_v7  ;;  %v268_v17 = vmul.f32 %v266_v4, %v181_v9  ;;  %v263_v22 = vmul.f32 %v260_v44, %v112_v13  ;;  %v305_v24 = vmul.f32 %v302_v51, %v112_v13 }
  0xcd   :  { %v114_v49 = vpop.f32.mrf.mxu0  ;;  %v184_v50 = vpop.f32.mrf.mxu1  ;;  %v310_v28 = vmul.f32 %v308_v57, %v181_v9  ;;  %v341_v36 = vmul.f32 %v339_v26, %v181_v9  ;;  %v336_v38 = vmul.f32 %v333_v0, %v112_v13 }
  0xce   :  { %v269_v25 = vmul.f32 %v266_v4, %v183_v14  ;;  %v270_v27 = vadd.f32 %v268_v17, %v262_v16  ;;  %v311_v29 = vmul.f32 %v308_v57, %v183_v14  ;;  %v342_v37 = vmul.f32 %v339_v26, %v183_v14  ;;  %v426_v1 = vpop.permute.xlu0 %425 }
  0xcf   :  { %v251_v52 = vpop.f32.mrf.mxu0  ;;  %v185_v53 = vpop.f32.mrf.mxu1  ;;  %v312_v39 = vadd.f32 %v310_v28, %v304_v23 }
  0xd0   :  { %v252_v18 = vadd.f32 %v251_v52, %v196_v10  ;;  %v271_v35 = vadd.f32 %v269_v25, %v263_v22  ;;  %v313_v40 = vadd.f32 %v311_v29, %v305_v24  ;;  %v343_v52 = vadd.f32 %v341_v36, %v335_v34 }
  0xd1   :  { %v253_v54 = vpop.f32.mrf.mxu0  ;;  %v344_v53 = vadd.f32 %v342_v37, %v336_v38 }
  0xd2   :  { %v254_v19 = vadd.f32 %v253_v54, %v200_v12  ;;  %v276_v30 = vmul.f32 %v274_v15, %v252_v18  ;;  %v318_v42 = vmul.f32 %v316_v60, %v252_v18  ;;  %v349_v54 = vmul.f32 %v347_v45, %v252_v18 }
  0xd3   :  { %v255_v55 = vpop.f32.mrf.mxu0 }
  0xd4   :  { %v277_v31 = vmul.f32 %v274_v15, %v254_v19  ;;  %v278_v41 = vadd.f32 %v276_v30, %v270_v27  ;;  %v319_v44 = vmul.f32 %v316_v60, %v254_v19  ;;  %v320_v51 = vadd.f32 %v318_v42, %v312_v39 }
  0xd5   :  { %v256_v58 = vpop.f32.mrf.mxu0  ;;  %v350_v57 = vmul.f32 %v347_v45, %v254_v19  ;;  %v351_v63 = vadd.f32 %v349_v54, %v343_v52 }
  0xd6   :  { %v279_v46 = vadd.f32 %v277_v31, %v271_v35  ;;  %v321_v56 = vadd.f32 %v319_v44, %v313_v40 }
  0xd7   :  { %v352_v0 = vadd.f32 %v350_v57, %v344_v53 }
  0xf1   :  { %v283_v43 = vpop.permute.xlu1 %282 }
  0xf2   :  { %v296_v47 = vmul.f32 %v289_v32, %v283_v43  ;;  %v297_v48 = vmul.f32 %v293_v33, %v283_v43 }
  0xf4   :  { %v810_v49 = vadd.f32 %v296_v47, %v278_v41  ;;  %v812_v50 = vadd.f32 %v297_v48, %v279_v46 }
  0xf5   :  { %v325_v55 = vpop.permute.xlu1 %324 }
  0xf6   :  { %482 = vst [vmem:[#allocation2] sm:$0xff] %v810_v49  ;;  %483 = vst [vmem:[#allocation2 + $0x8] sm:$0xff] %v812_v50  ;;  %v327_v58 = vmul.f32 %v325_v55, %v289_v32  ;;  %v328_v59 = vmul.f32 %v325_v55, %v293_v33  ;;  %v422_v8 = vmul.f32 %v803_v11, %v810_v49 }
  0xf7   :  { %v423_v9 = vmul.f32 %v803_v11, %v812_v50 }
  0xf8   :  { %v329_v60 = vadd.f32 %v327_v58, %v320_v51  ;;  %v330_v61 = vadd.f32 %v328_v59, %v321_v56 }
  0xf9   :  { %v356_v62 = vpop.permute.xlu1 %355 }
  0xfa   :  { %485 = vst [vmem:[#allocation2 + $0x10] sm:$0xff] %v329_v60  ;;  %486 = vst [vmem:[#allocation2 + $0x18] sm:$0xff] %v330_v61  ;;  %v358_v2 = vmul.f32 %v356_v62, %v289_v32  ;;  %v359_v3 = vmul.f32 %v356_v62, %v293_v33  ;;  %v428_v4 = vmul.f32 %v426_v1, %v329_v60 }
  0xfb   :  { %v429_v5 = vmul.f32 %v426_v1, %v330_v61 }
  0xfc   :  { %v360_v6 = vadd.f32 %v358_v2, %v351_v63  ;;  %v361_v7 = vadd.f32 %v359_v3, %v352_v0  ;;  %v430_v12 = vadd.f32 %v428_v4, %v422_v8 }
  0xfd   :  { %v431_v13 = vadd.f32 %v429_v5, %v423_v9 }
  0xfe   :  { %488 = vst [vmem:[#allocation2 + $0x20] sm:$0xff] %v360_v6  ;;  %489 = vst [vmem:[#allocation2 + $0x28] sm:$0xff] %v361_v7  ;;  %v442_v10 = vpop.permute.xlu1 %441  ;;  %v436_v14 = vmul.f32 %v805_v20, %v360_v6  ;;  %v437_v15 = vmul.f32 %v805_v20, %v361_v7 }
  0xff   :  { %629 = shalt.err (!%p626_p4)
}
 0x100   :  { %s692_s22 = smov 256   ;;  %s693_s23 = smov 16   ;;  %v438_v11 = vadd.f32 %v436_v14, %v430_v12  ;;  %v439_v16 = vadd.f32 %v437_v15, %v431_v13  ;;  %v364_v21 = vpop.permute.xlu0 %363 }
 0x101   :  { %506 = dma.vmem_to_hbm [thread:$0]  %s501_s3, 768, %s843_s5, [#allocation3], %s692_s22, %s692_s22, %s693_s23   ;;  %v366_v33 = vmul.f32 %v364_v21, %v810_v49  ;;  %v367_v34 = vmul.f32 %v364_v21, %v812_v50 }
 0x102   :  { %v444_v17 = vadd.f32 %v442_v10, %v438_v11  ;;  %v445_v18 = vadd.f32 %v442_v10, %v439_v16  ;;  %s694_s5 = smov [#allocation4]  }
 0x103   :  { %v370_v19 = vpop.permute.xlu1 %369  ;;  %s512_s26 = sshll.u32 %s694_s5, 4  ;;  %s513_s26 = int_to_ptr.vmem [resolvable:$true] %s512_s26 }
 0x104   :  { %614 = vrcp.f32 %v444_v17  ;;  %v398_v25 = vpop.permute.xlu0 %397  ;;  %v372_v27 = vmul.f32 %v370_v19, %v329_v60  ;;  %v373_v28 = vmul.f32 %v370_v19, %v330_v61  ;;  %s638_s27 = scalar_lea.vmem %s513_s26, 512  ;;  %p643_p6 = scmp.lt.s32.totalorder %s513_s26, %s513_s26 }
 0x105   :  { %616 = vrcp.f32 %v445_v18  ;;  %v400_v37 = vmul.f32 %v398_v25, %v329_v60  ;;  %v401_v38 = vmul.f32 %v398_v25, %v330_v61  ;;  %p639_p5 = scmp.ne.s32.totalorder %s513_s26, %s638_s27  ;;  %p644_p7 = scmp.lt.s32.totalorder %s638_s27, %s638_s27 }
 0x106   :  { %v374_v43 = vadd.f32 %v372_v27, %v366_v33  ;;  %v375_v44 = vadd.f32 %v373_v28, %v367_v34 }
 0x107   :  { %p645_p8 = por %p644_p7, %p643_p6 }
 0x108   :  { %v392_v20 = vpop.permute.xlu1 %391  ;;  %v386_v52 = vpop.permute.xlu0 %385 }
 0x109   :  { %v394_v31 = vmul.f32 %v392_v20, %v810_v49  ;;  %v395_v32 = vmul.f32 %v392_v20, %v812_v50  ;;  %p646_p9 = pnand %p645_p8, %p639_p5 }
 0x10b   :  { %v402_v45 = vadd.f32 %v400_v37, %v394_v31  ;;  %v403_v46 = vadd.f32 %v401_v38, %v395_v32 }
 0x10c   :  { %v472_v3 = vpop.permute.xlu0 %471 }
 0x10d   :  { %v378_v22 = vpop.permute.xlu1 %377 }
 0x10e   :  { %v380_v35 = vmul.f32 %v378_v22, %v360_v6  ;;  %v381_v36 = vmul.f32 %v378_v22, %v361_v7 }
 0x110   :  { %v382_v48 = vadd.f32 %v380_v35, %v374_v43  ;;  %v383_v51 = vadd.f32 %v381_v36, %v375_v44 }
 0x111   :  { %v615_v23 = vpop.eup %614 }
 0x112   :  { %v617_v24 = vpop.eup %616  ;;  %v448_v26 = vmul.f32 %v615_v23, %v444_v17  ;;  %v406_v29 = vpop.permute.xlu1 %405  ;;  %v388_v55 = vadd.f32 %v386_v52, %v382_v48  ;;  %v389_v56 = vadd.f32 %v386_v52, %v383_v51 }
 0x113   :  { %v449_v30 = vmul.f32 %v617_v24, %v445_v18  ;;  %v408_v39 = vmul.f32 %v406_v29, %v360_v6  ;;  %v409_v40 = vmul.f32 %v406_v29, %v361_v7 }
 0x114   :  { %v450_v41 = vsub.f32 2.0, %v448_v26 }
 0x115   :  { %v451_v42 = vsub.f32 2.0, %v449_v30  ;;  %v410_v53 = vadd.f32 %v408_v39, %v402_v45  ;;  %v411_v49 = vadd.f32 %v409_v40, %v403_v46 }
 0x116   :  { %v452_v54 = vmul.f32 %v615_v23, %v450_v41 }
 0x117   :  { %v414_v47 = vpop.permute.xlu1 %413  ;;  %v453_v50 = vmul.f32 %v617_v24, %v451_v42 }
 0x118   :  { %v416_v58 = vadd.f32 %v414_v47, %v410_v53  ;;  %v417_v59 = vadd.f32 %v414_v47, %v411_v49  ;;  %v454_v60 = vmul.f32 %v452_v54, %v388_v55 }
 0x119   :  { %v455_v61 = vmul.f32 %v453_v50, %v389_v56 }
 0x11a   :  { %v468_v0 = vmul.f32 %v452_v54, %v416_v58  ;;  %v469_v1 = vmul.f32 %v453_v50, %v417_v59 }
 0x11c   :  { %v458_v57 = vpop.permute.xlu1 %457  ;;  %v474_v6 = vmul.f32 %v472_v3, %v468_v0  ;;  %v475_v7 = vmul.f32 %v472_v3, %v469_v1 }
 0x11d   :  { %v460_v62 = vmul.f32 %v458_v57, %v454_v60  ;;  %v461_v63 = vmul.f32 %v458_v57, %v455_v61 }
 0x121   :  { %v464_v2 = vpop.permute.xlu1 %463 }
 0x122   :  { %v466_v4 = vadd.f32 %v464_v2, %v460_v62  ;;  %v467_v5 = vadd.f32 %v464_v2, %v461_v63 }
 0x124   :  { %490 = vst [vmem:[#allocation4] sm:$0xff] %v466_v4  ;;  %491 = vst [vmem:[#allocation4 + $0x8] sm:$0xff] %v467_v5 }
 0x126   :  { %v478_v8 = vpop.permute.xlu1 %477 }
 0x127   :  { %v480_v9 = vadd.f32 %v478_v8, %v474_v6  ;;  %v481_v10 = vadd.f32 %v478_v8, %v475_v7 }
 0x129   :  { %493 = vst [vmem:[#allocation4 + $0x10] sm:$0xff] %v480_v9  ;;  %494 = vst [vmem:[#allocation4 + $0x18] sm:$0xff] %v481_v10 }
 0x12a   :  { %649 = shalt.err (!%p646_p9)
}
 0x12b   :  { %518 = dma.vmem_to_hbm [thread:$0]  %s513_s26, 512, %s844_s6, [#allocation5], %s692_s22, %s692_s22, %s693_s23  }
 0x12c   :  { %658 = dma.done.wait [#allocation3], 768  }
 0x12d   :  { %659 = vsyncadd [#allocation3], 4294966528 }
 0x12e   :  { %660 = dma.done.wait [#allocation5], 512  }
 0x12f   :  { %661 = vsyncadd [#allocation5], 4294966784 }
 0x130   :  { %525 = vsyncpa [#allocation3], 1 }
 0x131   :  { %526 = vsyncpa [#allocation5], 1 }

</bundles_post_ra>
